<compile_context>
chip_gen: v5e
topology: v5e:2x2
jax: 0.10.0
libtpu: 0.0.40
codegen_flags: <defaults>
</compile_context>

<pallas_src>
import jax
import jax.numpy as jnp
import numpy as np
from jax.experimental import pallas as pl
from jax.experimental.pallas import tpu as pltpu


def _round_up(x, m):
    return ((x + m - 1) // m) * m


def cross_attention_kernel(q_ref, kv_ref, kt_ref, vv_ref, vt_ref,
                           wpack_ref, uvpack_ref, utpack_ref, r_ref,
                           qvT_ref, qtT_ref, out_ref):
    f32 = jnp.float32

    # Fused, lane-aligned energy blocks:
    #   e_full = [ Wh + U_v (padded to 128 lanes) | Wh + U_t (padded to 128 lanes) ]
    e_full = jnp.dot(q_ref[...], wpack_ref[...], preferred_element_type=f32)
    e_full = e_full + jnp.dot(kv_ref[...], uvpack_ref[...], preferred_element_type=f32)
    e_full = e_full + jnp.dot(kt_ref[...], utpack_ref[...], preferred_element_type=f32)

    # Signed-w reduction matmul: diff = w^T tanh(Wh+U_v) - w^T tanh(Wh+U_t).
    # (Padding columns are exactly zero -> tanh(0)=0 and R is zero there too.)
    diff = jnp.dot(jnp.tanh(e_full), r_ref[...], preferred_element_type=f32)  # [bB, 1]

    # Softmax over the two modalities == sigmoid of the logit difference.
    a_v = jax.nn.sigmoid(diff)
    a_t = 1.0 - a_v

    # Value projections and weighted sum (== bmm([B,1,2], [B,2,key])).
    vqv = jnp.dot(vv_ref[...], qvT_ref[...], preferred_element_type=f32)
    vqt = jnp.dot(vt_ref[...], qtT_ref[...], preferred_element_type=f32)
    out_ref[...] = (a_v * vqv + a_t * vqt).astype(out_ref.dtype)


def pack_cross_attention_params(params, query_size, key_size, bottleneck_size):
    """One-time packing: hoist transposes, build lane-aligned energy weight blocks.

    params: PyTorch nn.Linear convention, weight shape [out_features, in_features],
    all layers bias-free (matches the reference module).
    """
    pad = _round_up(bottleneck_size, 128)   # lane-aligned energy block width
    d_e = 2 * pad

    wpack = jnp.zeros((query_size, d_e), jnp.float32)
    wpack = wpack.at[:, 0:bottleneck_size].set(params["W"].T)            # Wh -> E_v block
    wpack = wpack.at[:, pad:pad + bottleneck_size].set(params["W"].T)    # Wh -> E_t block

    uvpack = jnp.zeros((key_size, d_e), jnp.float32)
    uvpack = uvpack.at[:, 0:bottleneck_size].set(params["U_v"].T)        # + U_v

    utpack = jnp.zeros((key_size, d_e), jnp.float32)
    utpack = utpack.at[:, pad:pad + bottleneck_size].set(params["U_t"].T)  # + U_t

    # Signed-w reduction matrix: diff = tanh(e_full) @ r  ==  e_v - e_t.
    r = jnp.zeros((d_e, 1), jnp.float32)
    r = r.at[0:bottleneck_size, 0].set(params["w"][0])
    r = r.at[pad:pad + bottleneck_size, 0].set(-params["w"][0])

    return {
        "wpack": jax.device_put(wpack),
        "uvpack": jax.device_put(uvpack),
        "utpack": jax.device_put(utpack),
        "r": jax.device_put(r),
        "qvT": jax.device_put(jnp.asarray(params["Q_v"]).T),
        "qtT": jax.device_put(jnp.asarray(params["Q_t"]).T),
        "query_size": query_size,
        "key_size": key_size,
        "bottleneck_size": bottleneck_size,
        "d_e": d_e,
    }


def cross_attention_pallas(query, keys_v, values_v, keys_t, values_t, packed):
    B = query.shape[0]
    query_size = packed["query_size"]
    key_size = packed["key_size"]
    d_e = packed["d_e"]

    # Batch tiling: large tiles amortize per-step overhead; keep >= 2 blocks at
    # large B so the parallel axis can be sharded across v7x's two TensorCores.
    if B <= 1024:
        block_b = B
    else:
        block_b = min(2048, _round_up(pl.cdiv(B, 2), 8))
    grid = (pl.cdiv(B, block_b),)

    row_spec = lambda width: pl.BlockSpec((block_b, width), lambda i: (i, 0))
    const_spec = lambda shape: pl.BlockSpec(shape, lambda i: (0, 0))

    out2d = pl.pallas_call(
        cross_attention_kernel,
        out_shape=jax.ShapeDtypeStruct((B, key_size), jnp.float32),
        grid_spec=pltpu.PrefetchScalarGridSpec(
            num_scalar_prefetch=0,
            grid=grid,
            in_specs=[
                row_spec(query_size),                 # query
                row_spec(key_size),                   # keys_v
                row_spec(key_size),                   # keys_t
                row_spec(key_size),                   # values_v
                row_spec(key_size),                   # values_t
                const_spec((query_size, d_e)),        # W   block (both energy halves)
                const_spec((key_size, d_e)),          # U_v block
                const_spec((key_size, d_e)),          # U_t block
                const_spec((d_e, 1)),                 # signed-w reduction matrix
                const_spec((key_size, key_size)),     # Q_v^T
                const_spec((key_size, key_size)),     # Q_t^T
            ],
            out_specs=pl.BlockSpec((block_b, key_size), lambda i: (i, 0)),
        ),
        compiler_params=pltpu.CompilerParams(
            dimension_semantics=("parallel",),
            vmem_limit_bytes=32 * 1024 * 1024,
        ),
    )(query, keys_v, keys_t, values_v, values_t,
      packed["wpack"], packed["uvpack"], packed["utpack"], packed["r"],
      packed["qvT"], packed["qtT"])

    # PyTorch returns [B, 1, key_size] from the bmm.
    return out2d[:, None, :]


def cross_attention_ref(query, keys_v, values_v, keys_t, values_t, params):
    """Pure-JAX reference mirroring the PyTorch forward."""
    Wh = query @ params["W"].T
    Uv = keys_v @ params["U_v"].T
    Ut = keys_t @ params["U_t"].T
    e_v = jnp.tanh(Wh + Uv) @ params["w"].T       # [B, 1]
    e_t = jnp.tanh(Wh + Ut) @ params["w"].T       # [B, 1]
    ee = jnp.concatenate([e_v, e_t], axis=1)      # [B, 2]
    wts = jax.nn.softmax(ee, axis=1)[:, None, :]  # [B, 1, 2]
    vQv = values_v @ params["Q_v"].T
    vQt = values_t @ params["Q_t"].T
    vals = jnp.stack([vQv, vQt], axis=1)          # [B, 2, key]
    return jnp.einsum("bij,bjk->bik", wts, vals)  # [B, 1, key]


if __name__ == "__main__":
    B = 8
    query_size = 32
    key_size = 64
    bottleneck_size = 32

    key = jax.random.PRNGKey(0)
    ks = jax.random.split(key, 11)

    # Deterministic synthetic parameters (PyTorch nn.Linear weight convention [out, in]).
    params = {
        "W":   0.1 * jax.random.normal(ks[0], (bottleneck_size, query_size), jnp.float32),
        "U_v": 0.1 * jax.random.normal(ks[1], (bottleneck_size, key_size), jnp.float32),
        "Q_v": 0.1 * jax.random.normal(ks[2], (key_size, key_size), jnp.float32),
        "U_t": 0.1 * jax.random.normal(ks[3], (bottleneck_size, key_size), jnp.float32),
        "Q_t": 0.1 * jax.random.normal(ks[4], (key_size, key_size), jnp.float32),
        "w":   0.1 * jax.random.normal(ks[5], (1, bottleneck_size), jnp.float32),
    }

    query    = jax.random.normal(ks[6],  (B, query_size), jnp.float32)
    keys_v   = jax.random.normal(ks[7],  (B, key_size), jnp.float32)
    values_v = jax.random.normal(ks[8],  (B, key_size), jnp.float32)
    keys_t   = jax.random.normal(ks[9],  (B, key_size), jnp.float32)
    values_t = jax.random.normal(ks[10], (B, key_size), jnp.float32)

    # Weight packing / transposes happen once, outside the per-call path.
    packed = pack_cross_attention_params(params, query_size, key_size, bottleneck_size)

    out = cross_attention_pallas(query, keys_v, values_v, keys_t, values_t, packed)
    out = jax.block_until_ready(out)

    ref = cross_attention_ref(query, keys_v, values_v, keys_t, values_t, params)
    np.testing.assert_allclose(np.asarray(out), np.asarray(ref), rtol=2e-5, atol=2e-5)
    assert out.shape == (B, 1, key_size)

    print("KERNEL_OK")
</pallas_src>

<mosaic_0001>
module attributes {stable_mosaic.version = 11 : i64} {
  func.func @cross_attention_kernel(%arg0: i32, %arg1: memref<8x32xf32, #tpu.memory_space<vmem>>, %arg2: memref<8x64xf32, #tpu.memory_space<vmem>>, %arg3: memref<8x64xf32, #tpu.memory_space<vmem>>, %arg4: memref<8x64xf32, #tpu.memory_space<vmem>>, %arg5: memref<8x64xf32, #tpu.memory_space<vmem>>, %arg6: memref<32x256xf32, #tpu.memory_space<vmem>>, %arg7: memref<64x256xf32, #tpu.memory_space<vmem>>, %arg8: memref<64x256xf32, #tpu.memory_space<vmem>>, %arg9: memref<256x1xf32, #tpu.memory_space<vmem>>, %arg10: memref<64x64xf32, #tpu.memory_space<vmem>>, %arg11: memref<64x64xf32, #tpu.memory_space<vmem>>, %arg12: memref<8x64xf32, #tpu.memory_space<vmem>>) attributes {dimension_semantics = [#tpu.dimension_semantics<parallel>], iteration_bounds = array<i64: 1>, scalar_prefetch = 0 : i64, scratch_operands = 0 : i64, tpu.core_type = #tpu.core_type<tc>, window_params = [{transform_indices = @transform_0, window_bounds = array<i64: 8, 32>}, {transform_indices = @transform_1, window_bounds = array<i64: 8, 64>}, {transform_indices = @transform_2, window_bounds = array<i64: 8, 64>}, {transform_indices = @transform_3, window_bounds = array<i64: 8, 64>}, {transform_indices = @transform_4, window_bounds = array<i64: 8, 64>}, {pipeline_mode = #tpu.pipeline_mode<synchronous>, transform_indices = @transform_5, window_bounds = array<i64: 32, 256>}, {pipeline_mode = #tpu.pipeline_mode<synchronous>, transform_indices = @transform_6, window_bounds = array<i64: 64, 256>}, {pipeline_mode = #tpu.pipeline_mode<synchronous>, transform_indices = @transform_7, window_bounds = array<i64: 64, 256>}, {pipeline_mode = #tpu.pipeline_mode<synchronous>, transform_indices = @transform_8, window_bounds = array<i64: 256, 1>}, {pipeline_mode = #tpu.pipeline_mode<synchronous>, transform_indices = @transform_9, window_bounds = array<i64: 64, 64>}, {pipeline_mode = #tpu.pipeline_mode<synchronous>, transform_indices = @transform_10, window_bounds = array<i64: 64, 64>}, {transform_indices = @transform_11, window_bounds = array<i64: 8, 64>}]} {
    %c0 = arith.constant 0 : index
    %c0_0 = arith.constant 0 : index
    %0 = vector.load %arg1[%c0, %c0_0] : memref<8x32xf32, #tpu.memory_space<vmem>>, vector<8x32xf32>
    %c0_1 = arith.constant 0 : index
    %c0_2 = arith.constant 0 : index
    %1 = vector.load %arg6[%c0_1, %c0_2] : memref<32x256xf32, #tpu.memory_space<vmem>>, vector<32x256xf32>
    %cst = arith.constant dense<0.000000e+00> : vector<8x256xf32>
    %2 = tpu.matmul %0, %1, %cst {dimension_numbers = #tpu.dot_dimension_numbers<[1], [0], [0], [1], [0, 0, 1, 1], [], []>} : vector<8x32xf32>, vector<32x256xf32>, vector<8x256xf32> -> vector<8x256xf32>
    %c0_3 = arith.constant 0 : index
    %c0_4 = arith.constant 0 : index
    %3 = vector.load %arg2[%c0_3, %c0_4] : memref<8x64xf32, #tpu.memory_space<vmem>>, vector<8x64xf32>
    %c0_5 = arith.constant 0 : index
    %c0_6 = arith.constant 0 : index
    %4 = vector.load %arg7[%c0_5, %c0_6] : memref<64x256xf32, #tpu.memory_space<vmem>>, vector<64x256xf32>
    %cst_7 = arith.constant dense<0.000000e+00> : vector<8x256xf32>
    %5 = tpu.matmul %3, %4, %cst_7 {dimension_numbers = #tpu.dot_dimension_numbers<[1], [0], [0], [1], [0, 0, 1, 1], [], []>} : vector<8x64xf32>, vector<64x256xf32>, vector<8x256xf32> -> vector<8x256xf32>
    %6 = arith.addf %2, %5 : vector<8x256xf32>
    %c0_8 = arith.constant 0 : index
    %c0_9 = arith.constant 0 : index
    %7 = vector.load %arg3[%c0_8, %c0_9] : memref<8x64xf32, #tpu.memory_space<vmem>>, vector<8x64xf32>
    %c0_10 = arith.constant 0 : index
    %c0_11 = arith.constant 0 : index
    %8 = vector.load %arg8[%c0_10, %c0_11] : memref<64x256xf32, #tpu.memory_space<vmem>>, vector<64x256xf32>
    %cst_12 = arith.constant dense<0.000000e+00> : vector<8x256xf32>
    %9 = tpu.matmul %7, %8, %cst_12 {dimension_numbers = #tpu.dot_dimension_numbers<[1], [0], [0], [1], [0, 0, 1, 1], [], []>} : vector<8x64xf32>, vector<64x256xf32>, vector<8x256xf32> -> vector<8x256xf32>
    %10 = arith.addf %6, %9 : vector<8x256xf32>
    %11 = math.tanh %10 : vector<8x256xf32>
    %c0_13 = arith.constant 0 : index
    %c0_14 = arith.constant 0 : index
    %12 = vector.load %arg9[%c0_13, %c0_14] : memref<256x1xf32, #tpu.memory_space<vmem>>, vector<256x1xf32>
    %cst_15 = arith.constant dense<0.000000e+00> : vector<8x1xf32>
    %13 = tpu.matmul %11, %12, %cst_15 {dimension_numbers = #tpu.dot_dimension_numbers<[1], [0], [0], [1], [0, 0, 1, 1], [], []>} : vector<8x256xf32>, vector<256x1xf32>, vector<8x1xf32> -> vector<8x1xf32>
    %14 = arith.negf %13 : vector<8x1xf32>
    %15 = math.exp %14 : vector<8x1xf32>
    %cst_16 = arith.constant 1.000000e+00 : f32
    %16 = vector.broadcast %cst_16 : f32 to vector<8x1xf32>
    %17 = arith.addf %16, %15 : vector<8x1xf32>
    %18 = arith.divf %16, %17 : vector<8x1xf32>
    %cst_17 = arith.constant 1.000000e+00 : f32
    %19 = vector.broadcast %cst_17 : f32 to vector<8x1xf32>
    %20 = arith.subf %19, %18 : vector<8x1xf32>
    %c0_18 = arith.constant 0 : index
    %c0_19 = arith.constant 0 : index
    %21 = vector.load %arg4[%c0_18, %c0_19] : memref<8x64xf32, #tpu.memory_space<vmem>>, vector<8x64xf32>
    %c0_20 = arith.constant 0 : index
    %c0_21 = arith.constant 0 : index
    %22 = vector.load %arg10[%c0_20, %c0_21] : memref<64x64xf32, #tpu.memory_space<vmem>>, vector<64x64xf32>
    %cst_22 = arith.constant dense<0.000000e+00> : vector<8x64xf32>
    %23 = tpu.matmul %21, %22, %cst_22 {dimension_numbers = #tpu.dot_dimension_numbers<[1], [0], [0], [1], [0, 0, 1, 1], [], []>} : vector<8x64xf32>, vector<64x64xf32>, vector<8x64xf32> -> vector<8x64xf32>
    %c0_23 = arith.constant 0 : index
    %c0_24 = arith.constant 0 : index
    %24 = vector.load %arg5[%c0_23, %c0_24] : memref<8x64xf32, #tpu.memory_space<vmem>>, vector<8x64xf32>
    %c0_25 = arith.constant 0 : index
    %c0_26 = arith.constant 0 : index
    %25 = vector.load %arg11[%c0_25, %c0_26] : memref<64x64xf32, #tpu.memory_space<vmem>>, vector<64x64xf32>
    %cst_27 = arith.constant dense<0.000000e+00> : vector<8x64xf32>
    %26 = tpu.matmul %24, %25, %cst_27 {dimension_numbers = #tpu.dot_dimension_numbers<[1], [0], [0], [1], [0, 0, 1, 1], [], []>} : vector<8x64xf32>, vector<64x64xf32>, vector<8x64xf32> -> vector<8x64xf32>
    %27 = vector.broadcast %18 : vector<8x1xf32> to vector<8x64xf32>
    %28 = arith.mulf %27, %23 : vector<8x64xf32>
    %29 = vector.broadcast %20 : vector<8x1xf32> to vector<8x64xf32>
    %30 = arith.mulf %29, %26 : vector<8x64xf32>
    %31 = arith.addf %28, %30 : vector<8x64xf32>
    %c0_28 = arith.constant 0 : index
    %c0_29 = arith.constant 0 : index
    %32 = vector.load %arg12[%c0_28, %c0_29] : memref<8x64xf32, #tpu.memory_space<vmem>>, vector<8x64xf32>
    tpu.vector_store %arg12[%c0_28, %c0_29], %31 {strides = array<i32>} : memref<8x64xf32, #tpu.memory_space<vmem>>, vector<8x64xf32>,
    return
  }
  func.func @transform_0(%arg0: i32) -> (i32, i32) {
    %c0_i32 = arith.constant 0 : i32
    %c0_i32_0 = arith.constant 0 : i32
    return %arg0, %c0_i32 : i32, i32
  }
  func.func @transform_1(%arg0: i32) -> (i32, i32) {
    %c0_i32 = arith.constant 0 : i32
    %c0_i32_0 = arith.constant 0 : i32
    return %arg0, %c0_i32 : i32, i32
  }
  func.func @transform_2(%arg0: i32) -> (i32, i32) {
    %c0_i32 = arith.constant 0 : i32
    %c0_i32_0 = arith.constant 0 : i32
    return %arg0, %c0_i32 : i32, i32
  }
  func.func @transform_3(%arg0: i32) -> (i32, i32) {
    %c0_i32 = arith.constant 0 : i32
    %c0_i32_0 = arith.constant 0 : i32
    return %arg0, %c0_i32 : i32, i32
  }
  func.func @transform_4(%arg0: i32) -> (i32, i32) {
    %c0_i32 = arith.constant 0 : i32
    %c0_i32_0 = arith.constant 0 : i32
    return %arg0, %c0_i32 : i32, i32
  }
  func.func @transform_5(%arg0: i32) -> (i32, i32) {
    %c0_i32 = arith.constant 0 : i32
    %c0_i32_0 = arith.constant 0 : i32
    %c0_i32_1 = arith.constant 0 : i32
    return %c0_i32, %c0_i32_0 : i32, i32
  }
  func.func @transform_6(%arg0: i32) -> (i32, i32) {
    %c0_i32 = arith.constant 0 : i32
    %c0_i32_0 = arith.constant 0 : i32
    %c0_i32_1 = arith.constant 0 : i32
    return %c0_i32, %c0_i32_0 : i32, i32
  }
  func.func @transform_7(%arg0: i32) -> (i32, i32) {
    %c0_i32 = arith.constant 0 : i32
    %c0_i32_0 = arith.constant 0 : i32
    %c0_i32_1 = arith.constant 0 : i32
    return %c0_i32, %c0_i32_0 : i32, i32
  }
  func.func @transform_8(%arg0: i32) -> (i32, i32) {
    %c0_i32 = arith.constant 0 : i32
    %c0_i32_0 = arith.constant 0 : i32
    %c0_i32_1 = arith.constant 0 : i32
    return %c0_i32, %c0_i32_0 : i32, i32
  }
  func.func @transform_9(%arg0: i32) -> (i32, i32) {
    %c0_i32 = arith.constant 0 : i32
    %c0_i32_0 = arith.constant 0 : i32
    %c0_i32_1 = arith.constant 0 : i32
    return %c0_i32, %c0_i32_0 : i32, i32
  }
  func.func @transform_10(%arg0: i32) -> (i32, i32) {
    %c0_i32 = arith.constant 0 : i32
    %c0_i32_0 = arith.constant 0 : i32
    %c0_i32_1 = arith.constant 0 : i32
    return %c0_i32, %c0_i32_0 : i32, i32
  }
  func.func @transform_11(%arg0: i32) -> (i32, i32) {
    %c0_i32 = arith.constant 0 : i32
    %c0_i32_0 = arith.constant 0 : i32
    return %arg0, %c0_i32 : i32, i32
  }
}

</mosaic_0001>

<bundles_post_ra>
// kernel: tpu_custom_call.1
= control target key start
LH: loop header
LB: loop body
LE: loop exit
PB: predicated region body
PF: predicated region fallthrough
CT: control target
= control target key end

     0   :  { %16 = vsyncpa [#allocation3], 0  ;;  %s1083_s0 = inlined_call_operand.hbm [shape: f32[8,32], index: 0, kind: input, shape index: {}]   ;;  %s1084_s1 = inlined_call_operand.hbm [shape: f32[8,64], index: 1, kind: input, shape index: {}]   ;;  %s1085_s2 = inlined_call_operand.hbm [shape: f32[8,64], index: 2, kind: input, shape index: {}]   ;;  %s1086_s3 = inlined_call_operand.hbm [shape: f32[8,64], index: 3, kind: input, shape index: {}]   ;;  %s1087_s4 = inlined_call_operand.hbm [shape: f32[8,64], index: 4, kind: input, shape index: {}]   ;;  %s1088_s5 = inlined_call_operand.hbm [shape: f32[32,256], index: 5, kind: input, shape index: {}]   ;;  %s1089_s6 = inlined_call_operand.vmem [shape: f32[64,256], index: 6, kind: input, shape index: {}]   ;;  %s1090_s7 = inlined_call_operand.vmem [shape: f32[64,256], index: 7, kind: input, shape index: {}]   ;;  %s1091_s8 = inlined_call_operand.vmem [shape: f32[256,1], index: 8, kind: input, shape index: {}]   ;;  %s1092_s9 = inlined_call_operand.hbm [shape: f32[64,64], index: 9, kind: input, shape index: {}]   ;;  %s1093_s10 = inlined_call_operand.hbm [shape: f32[64,64], index: 10, kind: input, shape index: {}]   ;;  %s1094_s11 = inlined_call_operand.hbm [shape: f32[8,64], index: 11, kind: output, shape index: {}]  }
   0x1   :  { %17 = vsyncpa [#allocation6], 0 }
   0x2   :  { %18 = vsyncpa [#allocation9], 0 }
   0x3   :  { %19 = vsyncpa [#allocation12], 0 }
   0x4   :  { %20 = vsyncpa [#allocation15], 0  ;;  %s38_s19 = sshll.u32 %s1084_s1, 4  ;;  %s39_s19 = int_to_ptr.hbm [resolvable:$true] %s38_s19 }
   0x5   :  { %21 = vsyncpa [#allocation4], 0  ;;  %s783_s20 = smov [#allocation5]   ;;  %s60_s24 = sshll.u32 %s1086_s3, 4  ;;  %s61_s24 = int_to_ptr.hbm [resolvable:$true] %s60_s24 }
   0x6   :  { %s40_s21 = sshll.u32 %s783_s20, 4  ;;  %s784_s25 = smov [#allocation8]   ;;  %s41_s21 = int_to_ptr.vmem [resolvable:$true] %s40_s21 }
   0x7   :  { %43 = dma.hbm_to_vmem [thread:$0]  %s39_s19, 128, %s41_s21, [#allocation6]  }
   0x8   :  { %s62_s26 = sshll.u32 %s784_s25, 4  ;;  %s81_s29 = sshll.u32 %s1088_s5, 4  ;;  %s63_s26 = int_to_ptr.vmem [resolvable:$true] %s62_s26  ;;  %s82_s29 = int_to_ptr.hbm [resolvable:$true] %s81_s29 }
   0x9   :  { %65 = dma.hbm_to_vmem [thread:$0]  %s61_s24, 128, %s63_s26, [#allocation9]  }
   0xa   :  { %s785_s1 = smov [#allocation11]   ;;  %s27_s14 = sshll.u32 %s1083_s0, 4  ;;  %s28_s14 = int_to_ptr.hbm [resolvable:$true] %s27_s14 }
   0xb   :  { %s83_s30 = sshll.u32 %s785_s1, 4  ;;  %s786_s15 = smov 256   ;;  %s84_s30 = int_to_ptr.vmem [resolvable:$true] %s83_s30 }
   0xc   :  { %s787_s3 = smov 16   ;;  %s788_s16 = smov [#allocation2]  }
   0xd   :  { %89 = dma.hbm_to_vmem [thread:$0]  %s82_s29, 1024, %s84_s30, [#allocation12], %s786_s15, %s786_s15, %s787_s3  }
   0xe   :  { %s29_s17 = sshll.u32 %s788_s16, 4  ;;  %s49_s5 = sshll.u32 %s1085_s2, 4  ;;  %s30_s17 = int_to_ptr.vmem [resolvable:$true] %s29_s17  ;;  %s50_s5 = int_to_ptr.hbm [resolvable:$true] %s49_s5 }
   0xf   :  { %32 = dma.hbm_to_vmem [thread:$0]  %s28_s14, 128, %s30_s17, [#allocation3]  }
  0x10   :  { %s71_s22 = sshll.u32 %s1087_s4, 4  ;;  %s789_s23 = smov [#allocation7]   ;;  %s72_s22 = int_to_ptr.hbm [resolvable:$true] %s71_s22 }
  0x11   :  { %s51_s24 = sshll.u32 %s789_s23, 4  ;;  %s790_s0 = smov [#allocation10]   ;;  %s52_s24 = int_to_ptr.vmem [resolvable:$true] %s51_s24 }
  0x12   :  { %54 = dma.hbm_to_vmem [thread:$0]  %s50_s5, 128, %s52_s24, [#allocation6]  }
  0x13   :  { %s73_s25 = sshll.u32 %s790_s0, 4  ;;  %s100_s28 = sshll.u32 %s1092_s9, 4  ;;  %s74_s25 = int_to_ptr.vmem [resolvable:$true] %s73_s25  ;;  %s101_s28 = int_to_ptr.hbm [resolvable:$true] %s100_s28 }
  0x14   :  { %76 = dma.hbm_to_vmem [thread:$0]  %s72_s22, 128, %s74_s25, [#allocation9]  }
  0x15   :  { %s791_s2 = smov [#allocation13]   ;;  %s113_s4 = sshll.u32 %s1093_s10, 4  ;;  %s114_s4 = int_to_ptr.hbm [resolvable:$true] %s113_s4 }
  0x16   :  { %s102_s29 = sshll.u32 %s791_s2, 4  ;;  %s792_s12 = smov 128   ;;  %s103_s29 = int_to_ptr.vmem [resolvable:$true] %s102_s29 }
  0x17   :  { %s793_s13 = smov 8   ;;  %s794_s14 = smov [#allocation14]  }
  0x18   :  { %108 = dma.hbm_to_vmem [thread:$0]  %s101_s28, 1024, %s103_s29, [#allocation12], %s792_s12, %s792_s12, %s793_s13  }
  0x19   :  { %s115_s15 = sshll.u32 %s794_s14, 4  ;;  %s116_s15 = int_to_ptr.vmem [resolvable:$true] %s115_s15 }
  0x1a   :  { %121 = dma.hbm_to_vmem [thread:$0]  %s114_s4, 1024, %s116_s15, [#allocation15], %s792_s12, %s792_s12, %s793_s13  }
  0x1b   :  { %771 = dma.done.wait [#allocation3], 128  }
  0x1c   :  { %772 = vsyncadd [#allocation3], 4294967168 }
  0x1d   :  { %773 = dma.done.wait [#allocation6], 256  }
  0x1e   :  { %774 = vsyncadd [#allocation6], 4294967040 }
  0x1f   :  { %775 = dma.done.wait [#allocation9], 256  }
  0x20   :  { %776 = vsyncadd [#allocation9], 4294967040 }
  0x21   :  { %777 = dma.done.wait [#allocation12], 2048  }
  0x22   :  { %778 = vsyncadd [#allocation12], 4294965248 }
  0x23   :  { %779 = dma.done.wait [#allocation15], 1024  }
  0x24   :  { %780 = vsyncadd [#allocation15], 4294966272  ;;  %v161_v0 = vld [vmem:[#allocation11 + $0x30] sm:$0xff]  ;;  %v162_v1 = vld [vmem:[#allocation11 + $0x38] sm:$0xff]  ;;  %vm224_vm0 = vcmask 261120   ;;  %vm180_vm1 = vcmask 523264  }
  0x25   :  { %v159_v2 = vld [vmem:[#allocation11 + $0x20] sm:$0xff]  ;;  %240 = vmatpush.msra.mxu2 %v161_v0  ;;  %260 = vmatpush.msra.mxu3 %v162_v1  ;;  %v160_v3 = vld [vmem:[#allocation11 + $0x28] sm:$0xff]  ;;  %v157_v4 = vld [vmem:[#allocation11 + $0x10] sm:$0xff]  ;;  %s509_s28 = sshll.u32 %s1094_s11, 4  ;;  %s510_s28 = int_to_ptr.hbm [resolvable:$true] %s509_s28 }
  0x26   :  { %v158_v5 = vld [vmem:[#allocation11 + $0x18] sm:$0xff]  ;;  %v178_v6 = vld [vmem:[%s1089_s6 + $0x70] sm:$0xff]  ;;  %v179_v7 = vld [vmem:[%s1089_s6 + $0x78] sm:$0xff] }
  0x27   :  { %241 = vmatpush.msra.mxu2 %v159_v2  ;;  %261 = vmatpush.msra.mxu3 %v160_v3  ;;  %v176_v8 = vld [vmem:[%s1089_s6 + $0x60] sm:$0xff]  ;;  %v177_v9 = vld [vmem:[%s1089_s6 + $0x68] sm:$0xff]  ;;  %v156_v11 = vld [vmem:[#allocation11 + $0x8] sm:$0xff] }
  0x28   :  { %192 = vmatpush.msra.mxu0 %v178_v6  ;;  %212 = vmatpush.msra.mxu1 %v179_v7  ;;  %v155_v10 = vld [vmem:[#allocation11] sm:$0xff]  ;;  %v283_v12 = vld [vmem:[%s1090_s7 + $0x70] sm:$0xff]  ;;  %v284_v13 = vld [vmem:[%s1090_s7 + $0x78] sm:$0xff] }
  0x29   :  { %242 = vmatpush.msra.mxu2 %v157_v4  ;;  %262 = vmatpush.msra.mxu3 %v158_v5  ;;  %v174_v14 = vld [vmem:[%s1089_s6 + $0x50] sm:$0xff]  ;;  %v175_v15 = vld [vmem:[%s1089_s6 + $0x58] sm:$0xff]  ;;  %v281_v16 = vld [vmem:[%s1090_s7 + $0x60] sm:$0xff] }
  0x2a   :  { %193 = vmatpush.msra.mxu0 %v176_v8  ;;  %213 = vmatpush.msra.mxu1 %v177_v9  ;;  %v282_v17 = vld [vmem:[%s1090_s7 + $0x68] sm:$0xff]  ;;  %v172_v18 = vld [vmem:[%s1089_s6 + $0x40] sm:$0xff]  ;;  %v279_v20 = vld [vmem:[%s1090_s7 + $0x50] sm:$0xff] }
  0x2b   :  { %243 = vmatpush.msra.mxu2 %v155_v10  ;;  %263 = vmatpush.msra.mxu3 %v156_v11  ;;  %v173_v19 = vld [vmem:[%s1089_s6 + $0x48] sm:$0xff]  ;;  %v280_v21 = vld [vmem:[%s1090_s7 + $0x58] sm:$0xff]  ;;  %v170_v22 = vld [vmem:[%s1089_s6 + $0x30] sm:$0xff] }
  0x2c   :  { %194 = vmatpush.msra.mxu0 %v174_v14  ;;  %214 = vmatpush.msra.mxu1 %v175_v15  ;;  %v171_v23 = vld [vmem:[%s1089_s6 + $0x38] sm:$0xff]  ;;  %v277_v24 = vld [vmem:[%s1090_s7 + $0x40] sm:$0xff]  ;;  %v278_v25 = vld [vmem:[%s1090_s7 + $0x48] sm:$0xff] }
  0x2d   :  { %296 = vmatpush.msrb.mxu2 %v283_v12  ;;  %316 = vmatpush.msrb.mxu3 %v284_v13  ;;  %v154_v26 = vld [vmem:[#allocation2] sm:$0xff]  ;;  %v169_v28 = vld [vmem:[%s1089_s6 + $0x28] sm:$0xff]  ;;  %v275_v29 = vld [vmem:[%s1090_s7 + $0x30] sm:$0xff] }
  0x2e   :  { %195 = vmatpush.msra.mxu0 %v172_v18  ;;  %215 = vmatpush.msra.mxu1 %v173_v19  ;;  %v168_v27 = vld [vmem:[%s1089_s6 + $0x20] sm:$0xff]  ;;  %v276_v30 = vld [vmem:[%s1090_s7 + $0x38] sm:$0xff]  ;;  %v166_v31 = vld [vmem:[%s1089_s6 + $0x10] sm:$0xff] }
  0x2f   :  { %297 = vmatpush.msrb.mxu2 %v281_v16  ;;  %317 = vmatpush.msrb.mxu3 %v282_v17  ;;  %v167_v32 = vld [vmem:[%s1089_s6 + $0x18] sm:$0xff]  ;;  %v273_v33 = vld [vmem:[%s1090_s7 + $0x20] sm:$0xff]  ;;  %v274_v34 = vld [vmem:[%s1090_s7 + $0x28] sm:$0xff] }
  0x30   :  { %196 = vmatpush.msra.mxu0 %v170_v22  ;;  %216 = vmatpush.msra.mxu1 %v171_v23  ;;  %v164_v35 = vld [vmem:[%s1089_s6] sm:$0xff]  ;;  %v165_v36 = vld [vmem:[%s1089_s6 + $0x8] sm:$0xff]  ;;  %v271_v37 = vld [vmem:[%s1090_s7 + $0x10] sm:$0xff] }
  0x31   :  { %298 = vmatpush.msrb.mxu2 %v279_v20  ;;  %318 = vmatpush.msrb.mxu3 %v280_v21  ;;  %v272_v38 = vld [vmem:[%s1090_s7 + $0x18] sm:$0xff]  ;;  %v163_v39 = vld [vmem:[#allocation5] sm:$0xff]  ;;  %v269_v40 = vld [vmem:[%s1090_s7] sm:$0xff] }
  0x32   :  { %525 = vmatmul.msk.f32.vlgmr.msra.gmra.mxu2 %vm224_vm0, %v154_v26  ;;  %526 = vmatmul.msk.f32.vlgmr.msra.gmra.mxu3 %vm224_vm0, %v154_v26  ;;  %v270_v41 = vld [vmem:[%s1090_s7 + $0x8] sm:$0xff]  ;;  %v268_v42 = vld [vmem:[#allocation7] sm:$0xff]  ;;  %v347_v43 = vld [vmem:[%s1091_s8 + $0x78] sm:$0xff] }
  0x33   :  { %299 = vmatpush.msrb.mxu2 %v277_v24  ;;  %319 = vmatpush.msrb.mxu3 %v278_v25  ;;  %v363_v44 = vld [vmem:[%s1091_s8 + $0xf8] sm:$0xff]  ;;  %v346_v45 = vld [vmem:[%s1091_s8 + $0x70] sm:$0xff]  ;;  %v345_v47 = vld [vmem:[%s1091_s8 + $0x68] sm:$0xff] }
  0x34   :  { %197 = vmatpush.msra.mxu0 %v168_v27  ;;  %217 = vmatpush.msra.mxu1 %v169_v28  ;;  %v362_v46 = vld [vmem:[%s1091_s8 + $0xf0] sm:$0xff]  ;;  %v361_v48 = vld [vmem:[%s1091_s8 + $0xe8] sm:$0xff]  ;;  %v344_v49 = vld [vmem:[%s1091_s8 + $0x60] sm:$0xff] }
  0x35   :  { %300 = vmatpush.msrb.mxu2 %v275_v29  ;;  %320 = vmatpush.msrb.mxu3 %v276_v30  ;;  %v360_v50 = vld [vmem:[%s1091_s8 + $0xe0] sm:$0xff]  ;;  %v343_v51 = vld [vmem:[%s1091_s8 + $0x58] sm:$0xff]  ;;  %v342_v53 = vld [vmem:[%s1091_s8 + $0x50] sm:$0xff] }
  0x36   :  { %198 = vmatpush.msra.mxu0 %v166_v31  ;;  %218 = vmatpush.msra.mxu1 %v167_v32  ;;  %v359_v52 = vld [vmem:[%s1091_s8 + $0xd8] sm:$0xff]  ;;  %v358_v54 = vld [vmem:[%s1091_s8 + $0xd0] sm:$0xff]  ;;  %v341_v55 = vld [vmem:[%s1091_s8 + $0x48] sm:$0xff] }
  0x37   :  { %301 = vmatpush.msrb.mxu2 %v273_v33  ;;  %321 = vmatpush.msrb.mxu3 %v274_v34  ;;  %v357_v56 = vld [vmem:[%s1091_s8 + $0xc8] sm:$0xff]  ;;  %v340_v57 = vld [vmem:[%s1091_s8 + $0x40] sm:$0xff]  ;;  %v339_v59 = vld [vmem:[%s1091_s8 + $0x38] sm:$0xff] }
  0x38   :  { %199 = vmatpush.msra.mxu0 %v164_v35  ;;  %219 = vmatpush.msra.mxu1 %v165_v36  ;;  %v356_v58 = vld [vmem:[%s1091_s8 + $0xc0] sm:$0xff]  ;;  %v355_v60 = vld [vmem:[%s1091_s8 + $0xb8] sm:$0xff]  ;;  %v338_v61 = vld [vmem:[%s1091_s8 + $0x30] sm:$0xff] }
  0x39   :  { %302 = vmatpush.msrb.mxu2 %v271_v37  ;;  %322 = vmatpush.msrb.mxu3 %v272_v38  ;;  %v354_v62 = vld [vmem:[%s1091_s8 + $0xb0] sm:$0xff]  ;;  %v337_v63 = vld [vmem:[%s1091_s8 + $0x28] sm:$0xff]  ;;  %v336_v1 = vld [vmem:[%s1091_s8 + $0x20] sm:$0xff]  ;;  %v795_v38 = vmov 0  }
  0x3a   :  { %523 = vmatmul.msk.f32.vlgmr.msra.gmra.mxu0 %vm180_vm1, %v163_v39  ;;  %524 = vmatmul.msk.f32.vlgmr.msra.gmra.mxu1 %vm180_vm1, %v163_v39  ;;  %v353_v0 = vld [vmem:[%s1091_s8 + $0xa8] sm:$0xff]  ;;  %v352_v2 = vld [vmem:[%s1091_s8 + $0xa0] sm:$0xff]  ;;  %v335_v3 = vld [vmem:[%s1091_s8 + $0x18] sm:$0xff] }
  0x3b   :  { %303 = vmatpush.msrb.mxu2 %v269_v40  ;;  %323 = vmatpush.msrb.mxu3 %v270_v41  ;;  %v351_v4 = vld [vmem:[%s1091_s8 + $0x98] sm:$0xff]  ;;  %v334_v5 = vld [vmem:[%s1091_s8 + $0x10] sm:$0xff]  ;;  %v333_v7 = vld [vmem:[%s1091_s8 + $0x8] sm:$0xff] }
  0x3c   :  { %527 = vmatmul.msk.f32.vlgmr.msrb.gmra.mxu2 %vm180_vm1, %v268_v42  ;;  %528 = vmatmul.msk.f32.vlgmr.msrb.gmra.mxu3 %vm180_vm1, %v268_v42  ;;  %v350_v6 = vld [vmem:[%s1091_s8 + $0x90] sm:$0xff]  ;;  %v349_v8 = vld [vmem:[%s1091_s8 + $0x88] sm:$0xff]  ;;  %v332_v9 = vld [vmem:[%s1091_s8] sm:$0xff] }
  0x3d   :  { %364 = vmatpush.msrb.mxu0 %v347_v43  ;;  %384 = vmatpush.msrb.mxu1 %v363_v44  ;;  %v348_v10 = vld [vmem:[%s1091_s8 + $0x80] sm:$0xff]  ;;  %v431_v24 = vld [vmem:[#allocation13 + $0x30] sm:$0xff]  ;;  %v430_v25 = vld [vmem:[#allocation13 + $0x28] sm:$0xff]  ;;  %s796_s8 = smov [#allocation16]  }
  0x3e   :  { %v432_v11 = vld [vmem:[#allocation13 + $0x38] sm:$0xff]  ;;  %v429_v26 = vld [vmem:[#allocation13 + $0x20] sm:$0xff]  ;;  %v427_v29 = vld [vmem:[#allocation13 + $0x10] sm:$0xff]  ;;  %546 = vset.pattern.permute.xlu0 %v795_v38  ;;  %s507_s25 = sshll.u32 %s796_s8, 4  ;;  %s508_s25 = int_to_ptr.vmem [resolvable:$true] %s507_s25 }
  0x3f   :  { %365 = vmatpush.msrb.mxu0 %v346_v45  ;;  %385 = vmatpush.msrb.mxu1 %v362_v46  ;;  %v428_v27 = vld [vmem:[#allocation13 + $0x18] sm:$0xff]  ;;  %v463_v30 = vld [vmem:[#allocation14 + $0x30] sm:$0xff]  ;;  %v426_v31 = vld [vmem:[#allocation13 + $0x8] sm:$0xff] }
  0x40   :  { %444 = vmatpush.msra.mxu2 %v432_v11  ;;  %v464_v28 = vld [vmem:[#allocation14 + $0x38] sm:$0xff]  ;;  %v462_v32 = vld [vmem:[#allocation14 + $0x28] sm:$0xff]  ;;  %v425_v33 = vld [vmem:[#allocation13] sm:$0xff] }
  0x41   :  { %366 = vmatpush.msrb.mxu0 %v345_v47  ;;  %386 = vmatpush.msrb.mxu1 %v361_v48  ;;  %v461_v34 = vld [vmem:[#allocation14 + $0x20] sm:$0xff]  ;;  %v424_v35 = vld [vmem:[#allocation8] sm:$0xff]  ;;  %v460_v36 = vld [vmem:[#allocation14 + $0x18] sm:$0xff] }
  0x42   :  { %445 = vmatpush.msra.mxu2 %v431_v24  ;;  %476 = vmatpush.msra.mxu3 %v464_v28  ;;  %v459_v37 = vld [vmem:[#allocation14 + $0x10] sm:$0xff]  ;;  %v458_v39 = vld [vmem:[#allocation14 + $0x8] sm:$0xff]  ;;  %v457_v40 = vld [vmem:[#allocation14] sm:$0xff] }
  0x43   :  { %367 = vmatpush.msrb.mxu0 %v344_v49  ;;  %387 = vmatpush.msrb.mxu1 %v360_v50  ;;  %v456_v41 = vld [vmem:[#allocation10] sm:$0xff] }
  0x44   :  { %446 = vmatpush.msra.mxu2 %v430_v25  ;;  %477 = vmatpush.msra.mxu3 %v463_v30 }
  0x45   :  { %368 = vmatpush.msrb.mxu0 %v343_v51  ;;  %388 = vmatpush.msrb.mxu1 %v359_v52 }
  0x46   :  { %447 = vmatpush.msra.mxu2 %v429_v26  ;;  %478 = vmatpush.msra.mxu3 %v462_v32 }
  0x47   :  { %369 = vmatpush.msrb.mxu0 %v342_v53  ;;  %389 = vmatpush.msrb.mxu1 %v358_v54 }
  0x48   :  { %448 = vmatpush.msra.mxu2 %v428_v27  ;;  %479 = vmatpush.msra.mxu3 %v461_v34 }
  0x49   :  { %370 = vmatpush.msrb.mxu0 %v341_v55  ;;  %390 = vmatpush.msrb.mxu1 %v357_v56 }
  0x4a   :  { %449 = vmatpush.msra.mxu2 %v427_v29  ;;  %480 = vmatpush.msra.mxu3 %v460_v36 }
  0x4b   :  { %371 = vmatpush.msrb.mxu0 %v340_v57  ;;  %391 = vmatpush.msrb.mxu1 %v356_v58 }
  0x4c   :  { %450 = vmatpush.msra.mxu2 %v426_v31  ;;  %481 = vmatpush.msra.mxu3 %v459_v37 }
  0x4d   :  { %372 = vmatpush.msrb.mxu0 %v339_v59  ;;  %392 = vmatpush.msrb.mxu1 %v355_v60 }
  0x4e   :  { %451 = vmatpush.msra.mxu2 %v425_v33  ;;  %482 = vmatpush.msra.mxu3 %v458_v39 }
  0x4f   :  { %373 = vmatpush.msrb.mxu0 %v338_v61  ;;  %393 = vmatpush.msrb.mxu1 %v354_v62 }
  0x50   :  { %530 = vmatmul.msk.f32.vlgmr.msra.gmra.mxu2 %vm180_vm1, %v424_v35  ;;  %483 = vmatpush.msra.mxu3 %v457_v40 }
  0x51   :  { %374 = vmatpush.msrb.mxu0 %v337_v63  ;;  %394 = vmatpush.msrb.mxu1 %v353_v0 }
  0x52   :  { %531 = vmatmul.msk.f32.vlgmr.msra.gmra.mxu3 %vm180_vm1, %v456_v41 }
  0x53   :  { %375 = vmatpush.msrb.mxu0 %v336_v1  ;;  %395 = vmatpush.msrb.mxu1 %v352_v2 }
  0x55   :  { %376 = vmatpush.msrb.mxu0 %v335_v3  ;;  %396 = vmatpush.msrb.mxu1 %v351_v4 }
  0x57   :  { %377 = vmatpush.msrb.mxu0 %v334_v5  ;;  %397 = vmatpush.msrb.mxu1 %v350_v6 }
  0x59   :  { %378 = vmatpush.msrb.mxu0 %v333_v7  ;;  %398 = vmatpush.msrb.mxu1 %v349_v8 }
  0x5b   :  { %379 = vmatpush.msrb.mxu0 %v332_v9  ;;  %399 = vmatpush.msrb.mxu1 %v348_v10 }
  0xb5   :  { %v245_v12 = vpop.f32.mrf.mxu2  ;;  %v265_v13 = vpop.f32.mrf.mxu3 }
  0xb7   :  { %v201_v14 = vpop.f32.mrf.mxu0  ;;  %v221_v15 = vpop.f32.mrf.mxu1 }
  0xb8   :  { %v246_v16 = vadd.f32 %v245_v12, %v201_v14  ;;  %v266_v17 = vadd.f32 %v265_v13, %v221_v15 }
  0xbf   :  { %v305_v18 = vpop.f32.mrf.mxu2  ;;  %v325_v19 = vpop.f32.mrf.mxu3 }
  0xc0   :  { %v328_v20 = vadd.f32 %v305_v18, %v246_v16  ;;  %v329_v21 = vadd.f32 %v325_v19, %v266_v17 }
  0xc2   :  { %547 = vtanh.f32 %v328_v20 }
  0xc3   :  { %549 = vtanh.f32 %v329_v21 }
  0xc8   :  { %v548_v22 = vpop.eup %547 }
  0xc9   :  { %v550_v23 = vpop.eup %549  ;;  %380 = vmatmul.f32.vlgmr.msrb.gmra.mxu0 %v548_v22 }
  0xca   :  { %400 = vmatmul.f32.vlgmr.msrb.gmra.mxu1 %v550_v23 }
  0xd3   :  { %v453_v60 = vpop.f32.mrf.mxu2 }
  0xd5   :  { %v485_v61 = vpop.f32.mrf.mxu3 }
 0x146   :  { %v381_v42 = vpop.f32.mrf.mxu0 }
 0x147   :  { %v401_v43 = vpop.f32.mrf.mxu1 }
 0x148   :  { %v402_v44 = vadd.f32 %v401_v43, %v381_v42 }
 0x14a   :  { %v529_v45 = vmul.f32 -1.442695, %v402_v44 }
 0x14c   :  { %551 = vpow2.f32 %v529_v45 }
 0x152   :  { %v552_v46 = vpop.eup %551 }
 0x153   :  { %v407_v47 = vadd.f32 1.0, %v552_v46 }
 0x155   :  { %553 = vrcp.f32 %v407_v47  ;;  %v419_v51 = vand.u32 2147483648, %v407_v47  ;;  %v417_v53 = vand.u32 2147483647, %v407_v47  ;;  %vm413_vm3 = vweird.f32 %v407_v47 }
 0x157   :  { %v420_v55 = vor.u32 1.1754944e-38, %v419_v51  ;;  %vm418_vm5 = vcmp.eq.f32.partialorder %v417_v53, 8.507059e+37 }
 0x15b   :  { %v554_v48 = vpop.eup %553 }
 0x15c   :  { %v409_v49 = vmul.f32 %v554_v48, %v407_v47  ;;  %vm414_vm2 = vweird.f32 %v554_v48 }
 0x15d   :  { %vm415_vm4 = vmor %vm413_vm3, %vm414_vm2 }
 0x15e   :  { %v410_v50 = vsub.f32 1.0, %v409_v49 }
 0x160   :  { %v411_v52 = vmul.f32 %v554_v48, %v410_v50 }
 0x162   :  { %v412_v54 = vadd.f32 %v554_v48, %v411_v52 }
 0x164   :  { %v416_v56 = vsel %vm415_vm4, %v554_v48, %v412_v54 }
 0x165   :  { %v421_v57 = vsel %vm418_vm5, %v420_v55, %v416_v56 }
 0x166   :  { %490 = vperm.xlu0 %546, %v421_v57   ;;  %v423_v58 = vsub.f32 1.0, %v421_v57 }
 0x16e   :  { %496 = vperm.xlu0 %546, %v423_v58  }
 0x1d8   :  { %v491_v59 = vpop.permute.xlu0 %490 }
 0x1d9   :  { %v493_v63 = vmul.f32 %v491_v59, %v453_v60 }
 0x1e0   :  { %v497_v62 = vpop.permute.xlu0 %496 }
 0x1e1   :  { %v499_v0 = vmul.f32 %v497_v62, %v485_v61 }
 0x1e3   :  { %v500_v1 = vadd.f32 %v499_v0, %v493_v63 }
 0x1e5   :  { %501 = vst.msk [vmem:[#allocation16] sm:$0xff] %vm180_vm1, %v500_v1 }
 0x1e6   :  { %512 = dma.vmem_to_hbm [thread:$0]  %s508_s25, 128, %s510_s28, [#allocation4]  }
 0x1e7   :  { %781 = dma.done.wait [#allocation4], 128  }
 0x1e8   :  { %782 = vsyncadd [#allocation4], 4294967168 }
 0x1e9   :  { %517 = vsyncpa [#allocation3], 1 }
 0x1ea   :  { %518 = vsyncpa [#allocation6], 1 }
 0x1eb   :  { %519 = vsyncpa [#allocation9], 1 }
 0x1ec   :  { %520 = vsyncpa [#allocation12], 1 }
 0x1ed   :  { %521 = vsyncpa [#allocation15], 1 }
 0x1ee   :  { %522 = vsyncpa [#allocation4], 1 }

</bundles_post_ra>
